<compile_context>
chip_gen: v6e
topology: v6e:2x2x1
jax: 0.10.0
libtpu: 0.0.40
codegen_flags: <defaults>
</compile_context>

<pallas_src>
import functools

import jax
import jax.numpy as jnp
from jax.experimental import pallas as pl
from jax.experimental.pallas import tpu as pltpu


def _alibi_add_kernel(x_ref, o_ref, *, feat_dim, shift):
    # x_ref / o_ref: (TB, TC) tile of the flattened [B, S*D] view.
    tc = x_ref.shape[1]
    col0 = pl.program_id(1) * tc
    # Bias is invariant along the batch (sublane) axis: synthesize one (1, TC) row and
    # let the add broadcast it across sublanes (cuts iota/div/cast VALU work by TBx).
    col = jax.lax.broadcasted_iota(jnp.int32, (1, tc), 1) + col0
    if shift is not None:                 # feat_dim is a power of two -> cheap shift
        seq = col >> shift
    else:                                 # general case: divide only the (1, TC) row
        seq = col // feat_dim
    bias = seq.astype(jnp.float32)        # keep bias in f32 (bf16 can't hold indices > 256)
    xv = x_ref[...]
    if xv.dtype != jnp.float32:
        xv = xv.astype(jnp.float32)
    o_ref[...] = (xv + bias).astype(o_ref.dtype)


def _largest_divisor_leq(m, cap):
    """Largest divisor of m that is <= cap (m >= 1, cap >= 1)."""
    cap = min(cap, m)
    best = 1
    i = 1
    while i * i <= m:
        if m % i == 0:
            if i <= cap:
                best = max(best, i)
            j = m // i
            if j <= cap:
                best = max(best, j)
        i += 1
    return best


def alibi_positional_embedding(x, num_positions, *, donate=False):
    """x: [B, S, D] (D = hidden_dim // 2). Returns x + alibi positional bias."""
    B, S, D = x.shape
    if S > num_positions:
        raise ValueError(f"sequence length {S} exceeds num_positions {num_positions}")

    L = S * D
    x2 = x.reshape(B, L)  # lane-dense 2D view; reshape is layout plumbing only
    itemsize = jnp.dtype(x.dtype).itemsize

    sub = 8 * max(1, 4 // itemsize)      # sublane packing: 8 f32, 16 bf16, 32 int8/fp8
    target_bytes = 4 << 20               # ~4 MiB per buffer -> (in+out) x 2 bufs ~16 MiB
    target_elems = max(128, target_bytes // itemsize)

    # ---- Row (sublane) tile: full batch when small, else sublane-packed blocks ----
    if B <= sub:
        TB = B                                               # full extent: always legal
    else:
        max_tb = max(sub, (target_elems // 128) // sub * sub)
        TB = min(B // sub * sub, max_tb)

    # ---- Column (lane) tile ----
    if L % 128 == 0:
        m = L // 128                                         # number of 128-lane columns
        cap = max(1, target_elems // TB // 128)              # budget in 128-lane columns
        cap = min(cap, m // 2) if m >= 2 else min(cap, m)    # >=2 tiles -> v7x 2-TC sharding
        t_div = _largest_divisor_leq(m, cap)
        t = t_div if 2 * t_div >= cap else cap               # prefer no ragged tail
        TC = 128 * t
    else:
        # Last-dim rule: block dim must be a multiple of 128 OR the full extent.
        TC = L
        budget = 40 << 20                 # keep 4 buffers under v7x's 64 MiB physical VMEM
        while TB > sub and 4 * TB * TC * itemsize > budget:
            TB = max(sub, (TB // 2) // sub * sub)

    grid = (pl.cdiv(B, TB), pl.cdiv(L, TC))
    shift = D.bit_length() - 1 if (D & (D - 1)) == 0 else None

    out2 = pl.pallas_call(
        functools.partial(_alibi_add_kernel, feat_dim=D, shift=shift),
        out_shape=jax.ShapeDtypeStruct((B, L), x.dtype),
        grid=grid,
        in_specs=[pl.BlockSpec((TB, TC), lambda i, j: (i, j))],
        out_specs=pl.BlockSpec((TB, TC), lambda i, j: (i, j)),
        compiler_params=pltpu.CompilerParams(
            dimension_semantics=("parallel", "parallel"),
            vmem_limit_bytes=64 * 1024 * 1024,
        ),
        input_output_aliases={0: 0} if donate else {},
    )(x2)
    return out2.reshape(B, S, D)


def _reference_forward(x, num_positions):
    # Mirrors the PyTorch module: float32 position_bias[s, d] = s, added to x.
    S, D = x.shape[1], x.shape[2]
    bias = jnp.tile(
        jnp.arange(num_positions, dtype=jnp.float32)[None, :], (D, 1)
    ).T  # [num_positions, hidden_dim // 2]
    return (x.astype(jnp.float32) + bias[:S]).astype(x.dtype)


if __name__ == "__main__":
    num_positions = 16
    key = jax.random.PRNGKey(0)

    cases = [
        ((2, 8, 16), jnp.float32),    # hidden_dim=32 -> D=16, L=128 (single column tile)
        ((16, 8, 48), jnp.float32),   # B > sublane pack, L=384 (multi column tiles)
        ((4, 6, 20), jnp.float32),    # L=120: not a 128-multiple -> full-extent fallback
        ((2, 8, 16), jnp.bfloat16),   # low-precision input, f32 bias/add in-kernel
    ]

    for shape, dtype in cases:
        key, subkey = jax.random.split(key)
        x = jax.random.normal(subkey, shape, dtype=jnp.float32).astype(dtype)
        out = jax.block_until_ready(alibi_positional_embedding(x, num_positions))
        ref = _reference_forward(x, num_positions)
        assert out.shape == x.shape and out.dtype == x.dtype, shape
        tol = 1e-6 if dtype == jnp.float32 else 2e-2
        assert jnp.allclose(
            out.astype(jnp.float32), ref.astype(jnp.float32), atol=tol
        ), f"mismatch vs reference for {shape} {dtype}"

    print("KERNEL_OK")
</pallas_src>

<mosaic_0001>
module attributes {stable_mosaic.version = 11 : i64} {
  func.func @_alibi_add_kernel(%arg0: i32, %arg1: i32, %arg2: memref<2x128xf32, #tpu.memory_space<vmem>>, %arg3: memref<2x128xf32, #tpu.memory_space<vmem>>) attributes {dimension_semantics = [#tpu.dimension_semantics<parallel>, #tpu.dimension_semantics<parallel>], iteration_bounds = array<i64: 1, 1>, scalar_prefetch = 0 : i64, scratch_operands = 0 : i64, tpu.core_type = #tpu.core_type<tc>, window_params = [{transform_indices = @transform_0, window_bounds = array<i64: 2, 128>}, {transform_indices = @transform_1, window_bounds = array<i64: 2, 128>}]} {
    %c128_i32 = arith.constant 128 : i32
    %0 = arith.muli %arg1, %c128_i32 : i32
    %1 = tpu.iota {dimensions = array<i32: 1>} : vector<1x128xi32>
    %2 = vector.broadcast %0 : i32 to vector<1x128xi32>
    %3 = arith.addi %1, %2 : vector<1x128xi32>
    %c4_i32 = arith.constant 4 : i32
    %4 = vector.broadcast %c4_i32 : i32 to vector<1x128xi32>
    %5 = arith.shrsi %3, %4 : vector<1x128xi32>
    %6 = arith.sitofp %5 : vector<1x128xi32> to vector<1x128xf32>
    %c0 = arith.constant 0 : index
    %c0_0 = arith.constant 0 : index
    %7 = vector.load %arg2[%c0, %c0_0] : memref<2x128xf32, #tpu.memory_space<vmem>>, vector<2x128xf32>
    %8 = vector.broadcast %6 : vector<1x128xf32> to vector<2x128xf32>
    %9 = arith.addf %7, %8 : vector<2x128xf32>
    %c0_1 = arith.constant 0 : index
    %c0_2 = arith.constant 0 : index
    %10 = vector.load %arg3[%c0_1, %c0_2] : memref<2x128xf32, #tpu.memory_space<vmem>>, vector<2x128xf32>
    tpu.vector_store %arg3[%c0_1, %c0_2], %9 {strides = array<i32>} : memref<2x128xf32, #tpu.memory_space<vmem>>, vector<2x128xf32>,
    return
  }
  func.func @transform_0(%arg0: i32, %arg1: i32) -> (i32, i32) {
    %c0_i32 = arith.constant 0 : i32
    return %arg0, %arg1 : i32, i32
  }
  func.func @transform_1(%arg0: i32, %arg1: i32) -> (i32, i32) {
    %c0_i32 = arith.constant 0 : i32
    return %arg0, %arg1 : i32, i32
  }
}

</mosaic_0001>

<bundles_post_ra>
// kernel: tpu_custom_call.1
= control target key start
LH: loop header
LB: loop body
LE: loop exit
PB: predicated region body
PF: predicated region fallthrough
CT: control target
= control target key end

     0   :  { %6 = vsyncpa [#allocation3], 0  ;;  %s110_s0 = inlined_call_operand.hbm [shape: f32[2,128], index: 0, kind: input, shape index: {}]   ;;  %s111_s1 = inlined_call_operand.hbm [shape: f32[2,128], index: 1, kind: output, shape index: {}]  }
   0x1   :  { %7 = vsyncpa [#allocation4], 0  ;;  %s92_s6 = smov [#allocation2]  }
   0x2   :  { %s14_s7 = sshll.u32 %s92_s6, 4  ;;  %s15_s7 = int_to_ptr.vmem [resolvable:$true] %s14_s7 }
   0x3   :  { %s56_s8 = scalar_lea.vmem %s15_s7, 32  ;;  %p61_p1 = scmp.lt.s32.totalorder %s15_s7, %s15_s7 }
   0x4   :  { %p57_p0 = scmp.ne.s32.totalorder %s15_s7, %s56_s8  ;;  %p62_p2 = scmp.lt.s32.totalorder %s56_s8, %s56_s8 }
   0x6   :  { %p63_p3 = por %p62_p2, %p61_p1 }
   0x8   :  { %p64_p4 = pnand %p63_p3, %p57_p0 }
   0xa   :  { %67 = shalt.err (!%p64_p4)
}
   0xb   :  { %17 = dma.hbm_to_vmem [thread:$0]  %s110_s0, 32, %s15_s7, [#allocation3]  }
   0xc   :  { %88 = dma.done.wait [#allocation3], 32  }
   0xd   :  { %89 = vsyncadd [#allocation3], 4294967264  ;;  %v22_v0 = vlaneseq  ;;  %s93_s11 = smov [#allocation5]   ;;  %v28_v4 = vld [vmem:[#allocation2] sm:$0x3] }
   0xe   :  { %s37_s12 = sshll.u32 %s93_s11, 4  ;;  %s38_s12 = int_to_ptr.vmem [resolvable:$true] %s37_s12 }
   0xf   :  { %v23_v1 = vand.u32 127, %v22_v0  ;;  %s68_s13 = scalar_lea.vmem %s38_s12, 32  ;;  %p73_p6 = scmp.lt.s32.totalorder %s38_s12, %s38_s12 }
  0x10   :  { %p69_p5 = scmp.ne.s32.totalorder %s38_s12, %s68_s13  ;;  %p74_p7 = scmp.lt.s32.totalorder %s68_s13, %s68_s13 }
  0x11   :  { %v26_v2 = vshra.s32 %v23_v1, 4 }
  0x12   :  { %p75_p8 = por %p74_p7, %p73_p6 }
  0x13   :  { %v27_v3 = vcvt.s32.f32 %v26_v2 }
  0x14   :  { %p76_p9 = pnand %p75_p8, %p69_p5 }
  0x15   :  { %v29_v5 = vadd.f32 %v28_v4, %v27_v3 }
  0x17   :  { %30 = vst [vmem:[#allocation5] sm:$0x3] %v29_v5 }
  0x18   :  { %79 = shalt.err (!%p76_p9)
}
  0x19   :  { %40 = dma.vmem_to_hbm [thread:$0]  %s38_s12, 32, %s111_s1, [#allocation4]  }
  0x1a   :  { %90 = dma.done.wait [#allocation4], 32  }
  0x1b   :  { %91 = vsyncadd [#allocation4], 4294967264 }
  0x1c   :  { %44 = vsyncpa [#allocation3], 1 }
  0x1d   :  { %45 = vsyncpa [#allocation4], 1 }

</bundles_post_ra>
